<compile_context>
chip_gen: v6e
topology: v6e:2x2x1
jax: 0.10.0
libtpu: 0.0.40
codegen_flags: <defaults>
</compile_context>

<pallas_src>
import functools

import jax
import jax.numpy as jnp
from jax.experimental import pallas as pl
from jax.experimental.pallas import tpu as pltpu


def _encoder_kernel(x_ref,
                    w1_ref, b1_ref,
                    w2_ref, b2_ref,
                    w3_ref, b3_ref,
                    w4_ref, b4_ref,
                    o_ref):
    """Fused 4-layer MLP (Linear+ReLU x3, final Linear) on one batch tile.

    Inputs/weights are bf16, biases f32, accumulation f32 on the MXU.
    """
    bf16 = jnp.bfloat16

    h = jnp.dot(x_ref[...], w1_ref[...],
                preferred_element_type=jnp.float32) + b1_ref[...]
    h = jnp.maximum(h, 0.0).astype(bf16)

    h = jnp.dot(h, w2_ref[...],
                preferred_element_type=jnp.float32) + b2_ref[...]
    h = jnp.maximum(h, 0.0).astype(bf16)

    h = jnp.dot(h, w3_ref[...],
                preferred_element_type=jnp.float32) + b3_ref[...]
    h = jnp.maximum(h, 0.0).astype(bf16)

    out = jnp.dot(h, w4_ref[...],
                  preferred_element_type=jnp.float32) + b4_ref[...]
    o_ref[...] = out.astype(o_ref.dtype)


def _round_up(v, m):
    return ((v + m - 1) // m) * m


def met2lwf_forward(x, params, *, batch_tile=512):
    """Pallas-accelerated Met2LwF.forward (the encoder).

    x:      (B, nInput) float
    params: [(w1,b1),(w2,b2),(w3,b3),(w4,b4)] with w (in,out), b (1,out)
    returns (B, nLatent) float32
    """
    (w1, b1), (w2, b2), (w3, b3), (w4, b4) = params
    B, n_in = x.shape
    n_latent = w4.shape[1]

    bf16 = jnp.bfloat16
    f32 = jnp.float32

    # bf16 activations + weights, f32 biases (added to the f32 accumulator).
    x_bf = x.astype(bf16)
    w1b, w2b, w3b = w1.astype(bf16), w2.astype(bf16), w3.astype(bf16)
    b1f, b2f, b3f = b1.astype(f32), b2.astype(f32), b3.astype(f32)

    # Lane-dense output: zero-pad the final layer to a multiple of 128 columns
    # so stores are full-lane vst instead of masked partial stores. The extra
    # columns are free on the MXU; we slice them off afterwards.
    n_out_pad = _round_up(max(n_latent, 128), 128)
    w4p = jnp.zeros((w4.shape[0], n_out_pad), bf16).at[:, :n_latent].set(
        w4.astype(bf16))
    b4p = jnp.zeros((1, n_out_pad), f32).at[:, :n_latent].set(b4.astype(f32))

    # Effective batch tile: as large as requested, but never pad a tiny batch
    # all the way up to batch_tile (just round to the sublane multiple of 8).
    tile = min(batch_tile, _round_up(B, 8))
    # v7x has 2 TensorCores; keep >=2 grid steps when the batch is big enough
    # so the "parallel" axis can be sharded across both.
    if _round_up(B, tile) == tile and tile >= 512:
        tile //= 2
    B_pad = _round_up(B, tile)
    if B_pad != B:
        x_bf = jnp.pad(x_bf, ((0, B_pad - B), (0, 0)))

    grid = (B_pad // tile,)

    flops = 2 * B_pad * (n_in * 128 + 128 * 256 + 256 * 128 + 128 * n_out_pad)
    bytes_accessed = (
        B_pad * n_in * 2                      # x (bf16)
        + B_pad * n_out_pad * 4               # out (f32)
        + 2 * (int(w1b.size) + int(w2b.size) + int(w3b.size) + int(w4p.size))
        + 4 * (int(b1f.size) + int(b2f.size) + int(b3f.size) + int(b4p.size))
    )

    # Weights/biases are small (~300 KB total); present them as full blocks
    # with a constant index_map so they stay VMEM-resident across the grid.
    def full(shape):
        nd = len(shape)
        return pl.BlockSpec(shape, lambda i: (0,) * nd)

    out = pl.pallas_call(
        _encoder_kernel,
        out_shape=jax.ShapeDtypeStruct((B_pad, n_out_pad), jnp.float32),
        grid_spec=pltpu.PrefetchScalarGridSpec(
            num_scalar_prefetch=0,
            grid=grid,
            in_specs=[
                pl.BlockSpec((tile, n_in), lambda i: (i, 0)),
                full(w1b.shape), full(b1f.shape),
                full(w2b.shape), full(b2f.shape),
                full(w3b.shape), full(b3f.shape),
                full(w4p.shape), full(b4p.shape),
            ],
            out_specs=pl.BlockSpec((tile, n_out_pad), lambda i: (i, 0)),
        ),
        compiler_params=pltpu.CompilerParams(
            dimension_semantics=("parallel",),
        ),
        cost_estimate=pl.CostEstimate(
            flops=flops, transcendentals=0, bytes_accessed=bytes_accessed),
    )(x_bf, w1b, b1f, w2b, b2f, w3b, b3f, w4p, b4p)

    return out[:B, :n_latent]


def init_encoder_params(key, n_input, n_latent=30):
    """Deterministic synthetic init mimicking the torch Linear shapes.

    torch.nn.Linear(in, out) holds weight (out, in); we store its transpose
    (in, out) so the kernel does x @ W + b.
    """
    dims = [(n_input, 128), (128, 256), (256, 128), (128, n_latent)]
    params = []
    for (fin, fout) in dims:
        key, kw, kb = jax.random.split(key, 3)
        bound = 1.0 / jnp.sqrt(jnp.float32(fin))
        w = jax.random.uniform(kw, (fin, fout), jnp.float32, -bound, bound)
        b = jax.random.uniform(kb, (1, fout), jnp.float32, -bound, bound)
        params.append((w, b))
    return params


def _reference_forward(x, params):
    """Pure-JAX reference using the same bf16-quantized weights/inputs
    (f32 accumulation) so tolerances stay tight."""
    h = x.astype(jnp.bfloat16).astype(jnp.float32)
    for i, (w, b) in enumerate(params):
        wq = w.astype(jnp.bfloat16).astype(jnp.float32)
        h = h @ wq + b.astype(jnp.float32)
        if i < len(params) - 1:
            h = jnp.maximum(h, 0.0)
    return h


if __name__ == "__main__":
    key = jax.random.PRNGKey(0)
    k_params, k_x = jax.random.split(key)

    B, N_INPUT, N_LATENT = 16, 64, 30
    params = init_encoder_params(k_params, N_INPUT, N_LATENT)
    x = jax.random.normal(k_x, (B, N_INPUT), jnp.float32)

    fwd = jax.jit(functools.partial(met2lwf_forward, batch_tile=512))
    out = fwd(x, params)
    out = jax.block_until_ready(out)

    ref = _reference_forward(x, params)
    assert out.shape == (B, N_LATENT)
    # bf16 matmul inputs with f32 accumulation -> loosen tolerance vs f32 ref.
    assert jnp.allclose(out, ref, atol=3e-2, rtol=3e-2), (
        float(jnp.max(jnp.abs(out - ref))))

    # Also exercise a ragged batch (padding path), no hard divisibility assert.
    x_ragged = jax.random.normal(k_x, (B + 3, N_INPUT), jnp.float32)
    out_r = jax.block_until_ready(met2lwf_forward(x_ragged, params))
    ref_r = _reference_forward(x_ragged, params)
    assert out_r.shape == (B + 3, N_LATENT)
    assert jnp.allclose(out_r, ref_r, atol=3e-2, rtol=3e-2)

    # TODO(synk): LwFloss / reconstruction_loss / metric_loss / fit are
    # training-time utilities (MSE vs frozen old models, triplet mining,
    # SMOTE balancing) and are not part of forward(); only the encoder
    # forward is implemented as a kernel.
    print("KERNEL_OK")
</pallas_src>

<mosaic_0001>
module attributes {stable_mosaic.version = 11 : i64} {
  func.func @_encoder_kernel(%arg0: i32, %arg1: memref<16x64xbf16, #tpu.memory_space<vmem>>, %arg2: memref<64x128xbf16, #tpu.memory_space<vmem>>, %arg3: memref<1x128xf32, #tpu.memory_space<vmem>>, %arg4: memref<128x256xbf16, #tpu.memory_space<vmem>>, %arg5: memref<1x256xf32, #tpu.memory_space<vmem>>, %arg6: memref<256x128xbf16, #tpu.memory_space<vmem>>, %arg7: memref<1x128xf32, #tpu.memory_space<vmem>>, %arg8: memref<128x128xbf16, #tpu.memory_space<vmem>>, %arg9: memref<1x128xf32, #tpu.memory_space<vmem>>, %arg10: memref<16x128xf32, #tpu.memory_space<vmem>>) attributes {dimension_semantics = [#tpu.dimension_semantics<parallel>], iteration_bounds = array<i64: 1>, scalar_prefetch = 0 : i64, scratch_operands = 0 : i64, tpu.core_type = #tpu.core_type<tc>, window_params = [{transform_indices = @transform_0, window_bounds = array<i64: 16, 64>}, {pipeline_mode = #tpu.pipeline_mode<synchronous>, transform_indices = @transform_1, window_bounds = array<i64: 64, 128>}, {pipeline_mode = #tpu.pipeline_mode<synchronous>, transform_indices = @transform_2, window_bounds = array<i64: 1, 128>}, {pipeline_mode = #tpu.pipeline_mode<synchronous>, transform_indices = @transform_3, window_bounds = array<i64: 128, 256>}, {pipeline_mode = #tpu.pipeline_mode<synchronous>, transform_indices = @transform_4, window_bounds = array<i64: 1, 256>}, {pipeline_mode = #tpu.pipeline_mode<synchronous>, transform_indices = @transform_5, window_bounds = array<i64: 256, 128>}, {pipeline_mode = #tpu.pipeline_mode<synchronous>, transform_indices = @transform_6, window_bounds = array<i64: 1, 128>}, {pipeline_mode = #tpu.pipeline_mode<synchronous>, transform_indices = @transform_7, window_bounds = array<i64: 128, 128>}, {pipeline_mode = #tpu.pipeline_mode<synchronous>, transform_indices = @transform_8, window_bounds = array<i64: 1, 128>}, {transform_indices = @transform_9, window_bounds = array<i64: 16, 128>}]} {
    %c0 = arith.constant 0 : index
    %c0_0 = arith.constant 0 : index
    %0 = vector.load %arg1[%c0, %c0_0] : memref<16x64xbf16, #tpu.memory_space<vmem>>, vector<16x64xbf16>
    %c0_1 = arith.constant 0 : index
    %c0_2 = arith.constant 0 : index
    %1 = vector.load %arg2[%c0_1, %c0_2] : memref<64x128xbf16, #tpu.memory_space<vmem>>, vector<64x128xbf16>
    %cst = arith.constant dense<0.000000e+00> : vector<16x128xf32>
    %2 = tpu.matmul %0, %1, %cst {dimension_numbers = #tpu.dot_dimension_numbers<[1], [0], [0], [1], [0, 0, 1, 1], [], []>} : vector<16x64xbf16>, vector<64x128xbf16>, vector<16x128xf32> -> vector<16x128xf32>
    %c0_3 = arith.constant 0 : index
    %c0_4 = arith.constant 0 : index
    %3 = vector.load %arg3[%c0_3, %c0_4] : memref<1x128xf32, #tpu.memory_space<vmem>>, vector<1x128xf32>
    %4 = vector.broadcast %3 : vector<1x128xf32> to vector<16x128xf32>
    %5 = arith.addf %2, %4 : vector<16x128xf32>
    %cst_5 = arith.constant 0.000000e+00 : f32
    %6 = vector.broadcast %cst_5 : f32 to vector<16x128xf32>
    %7 = arith.maximumf %5, %6 : vector<16x128xf32>
    %8 = arith.truncf %7 : vector<16x128xf32> to vector<16x128xbf16>
    %c0_6 = arith.constant 0 : index
    %c0_7 = arith.constant 0 : index
    %9 = vector.load %arg4[%c0_6, %c0_7] : memref<128x256xbf16, #tpu.memory_space<vmem>>, vector<128x256xbf16>
    %cst_8 = arith.constant dense<0.000000e+00> : vector<16x256xf32>
    %10 = tpu.matmul %8, %9, %cst_8 {dimension_numbers = #tpu.dot_dimension_numbers<[1], [0], [0], [1], [0, 0, 1, 1], [], []>} : vector<16x128xbf16>, vector<128x256xbf16>, vector<16x256xf32> -> vector<16x256xf32>
    %c0_9 = arith.constant 0 : index
    %c0_10 = arith.constant 0 : index
    %11 = vector.load %arg5[%c0_9, %c0_10] : memref<1x256xf32, #tpu.memory_space<vmem>>, vector<1x256xf32>
    %12 = vector.broadcast %11 : vector<1x256xf32> to vector<16x256xf32>
    %13 = arith.addf %10, %12 : vector<16x256xf32>
    %cst_11 = arith.constant 0.000000e+00 : f32
    %14 = vector.broadcast %cst_11 : f32 to vector<16x256xf32>
    %15 = arith.maximumf %13, %14 : vector<16x256xf32>
    %16 = arith.truncf %15 : vector<16x256xf32> to vector<16x256xbf16>
    %c0_12 = arith.constant 0 : index
    %c0_13 = arith.constant 0 : index
    %17 = vector.load %arg6[%c0_12, %c0_13] : memref<256x128xbf16, #tpu.memory_space<vmem>>, vector<256x128xbf16>
    %cst_14 = arith.constant dense<0.000000e+00> : vector<16x128xf32>
    %18 = tpu.matmul %16, %17, %cst_14 {dimension_numbers = #tpu.dot_dimension_numbers<[1], [0], [0], [1], [0, 0, 1, 1], [], []>} : vector<16x256xbf16>, vector<256x128xbf16>, vector<16x128xf32> -> vector<16x128xf32>
    %c0_15 = arith.constant 0 : index
    %c0_16 = arith.constant 0 : index
    %19 = vector.load %arg7[%c0_15, %c0_16] : memref<1x128xf32, #tpu.memory_space<vmem>>, vector<1x128xf32>
    %20 = vector.broadcast %19 : vector<1x128xf32> to vector<16x128xf32>
    %21 = arith.addf %18, %20 : vector<16x128xf32>
    %cst_17 = arith.constant 0.000000e+00 : f32
    %22 = vector.broadcast %cst_17 : f32 to vector<16x128xf32>
    %23 = arith.maximumf %21, %22 : vector<16x128xf32>
    %24 = arith.truncf %23 : vector<16x128xf32> to vector<16x128xbf16>
    %c0_18 = arith.constant 0 : index
    %c0_19 = arith.constant 0 : index
    %25 = vector.load %arg8[%c0_18, %c0_19] : memref<128x128xbf16, #tpu.memory_space<vmem>>, vector<128x128xbf16>
    %cst_20 = arith.constant dense<0.000000e+00> : vector<16x128xf32>
    %26 = tpu.matmul %24, %25, %cst_20 {dimension_numbers = #tpu.dot_dimension_numbers<[1], [0], [0], [1], [0, 0, 1, 1], [], []>} : vector<16x128xbf16>, vector<128x128xbf16>, vector<16x128xf32> -> vector<16x128xf32>
    %c0_21 = arith.constant 0 : index
    %c0_22 = arith.constant 0 : index
    %27 = vector.load %arg9[%c0_21, %c0_22] : memref<1x128xf32, #tpu.memory_space<vmem>>, vector<1x128xf32>
    %28 = vector.broadcast %27 : vector<1x128xf32> to vector<16x128xf32>
    %29 = arith.addf %26, %28 : vector<16x128xf32>
    %c0_23 = arith.constant 0 : index
    %c0_24 = arith.constant 0 : index
    %30 = vector.load %arg10[%c0_23, %c0_24] : memref<16x128xf32, #tpu.memory_space<vmem>>, vector<16x128xf32>
    tpu.vector_store %arg10[%c0_23, %c0_24], %29 {strides = array<i32>} : memref<16x128xf32, #tpu.memory_space<vmem>>, vector<16x128xf32>,
    return
  }
  func.func @transform_0(%arg0: i32) -> (i32, i32) {
    %c0_i32 = arith.constant 0 : i32
    %c0_i32_0 = arith.constant 0 : i32
    return %arg0, %c0_i32 : i32, i32
  }
  func.func @transform_1(%arg0: i32) -> (i32, i32) {
    %c0_i32 = arith.constant 0 : i32
    %c0_i32_0 = arith.constant 0 : i32
    %c0_i32_1 = arith.constant 0 : i32
    return %c0_i32, %c0_i32_0 : i32, i32
  }
  func.func @transform_2(%arg0: i32) -> (i32, i32) {
    %c0_i32 = arith.constant 0 : i32
    %c0_i32_0 = arith.constant 0 : i32
    %c0_i32_1 = arith.constant 0 : i32
    return %c0_i32, %c0_i32_0 : i32, i32
  }
  func.func @transform_3(%arg0: i32) -> (i32, i32) {
    %c0_i32 = arith.constant 0 : i32
    %c0_i32_0 = arith.constant 0 : i32
    %c0_i32_1 = arith.constant 0 : i32
    return %c0_i32, %c0_i32_0 : i32, i32
  }
  func.func @transform_4(%arg0: i32) -> (i32, i32) {
    %c0_i32 = arith.constant 0 : i32
    %c0_i32_0 = arith.constant 0 : i32
    %c0_i32_1 = arith.constant 0 : i32
    return %c0_i32, %c0_i32_0 : i32, i32
  }
  func.func @transform_5(%arg0: i32) -> (i32, i32) {
    %c0_i32 = arith.constant 0 : i32
    %c0_i32_0 = arith.constant 0 : i32
    %c0_i32_1 = arith.constant 0 : i32
    return %c0_i32, %c0_i32_0 : i32, i32
  }
  func.func @transform_6(%arg0: i32) -> (i32, i32) {
    %c0_i32 = arith.constant 0 : i32
    %c0_i32_0 = arith.constant 0 : i32
    %c0_i32_1 = arith.constant 0 : i32
    return %c0_i32, %c0_i32_0 : i32, i32
  }
  func.func @transform_7(%arg0: i32) -> (i32, i32) {
    %c0_i32 = arith.constant 0 : i32
    %c0_i32_0 = arith.constant 0 : i32
    %c0_i32_1 = arith.constant 0 : i32
    return %c0_i32, %c0_i32_0 : i32, i32
  }
  func.func @transform_8(%arg0: i32) -> (i32, i32) {
    %c0_i32 = arith.constant 0 : i32
    %c0_i32_0 = arith.constant 0 : i32
    %c0_i32_1 = arith.constant 0 : i32
    return %c0_i32, %c0_i32_0 : i32, i32
  }
  func.func @transform_9(%arg0: i32) -> (i32, i32) {
    %c0_i32 = arith.constant 0 : i32
    %c0_i32_0 = arith.constant 0 : i32
    return %arg0, %c0_i32 : i32, i32
  }
}

</mosaic_0001>

<bundles_post_ra>
// kernel: met2lwf_forward.1
= control target key start
LH: loop header
LB: loop body
LE: loop exit
PB: predicated region body
PF: predicated region fallthrough
CT: control target
= control target key end

     0   :  { %v792_v1 = vmov 0.0   ;;  %vm793_vm0 = vmmov 0   ;;  %vm80_vm1 = vcmask 523264   ;;  %s1014_s0 = inlined_call_operand.vmem [shape: bf16[16,64], index: 0, kind: input, shape index: {}]   ;;  %s1015_s1 = inlined_call_operand.vmem [shape: bf16[64,128], index: 1, kind: input, shape index: {}]   ;;  %s1016_s2 = inlined_call_operand.vmem [shape: f32[1,128], index: 2, kind: input, shape index: {}]   ;;  %s1017_s3 = inlined_call_operand.vmem [shape: bf16[128,256], index: 3, kind: input, shape index: {}]   ;;  %s1018_s4 = inlined_call_operand.vmem [shape: f32[1,256], index: 4, kind: input, shape index: {}]   ;;  %s1019_s5 = inlined_call_operand.vmem [shape: bf16[256,128], index: 5, kind: input, shape index: {}]   ;;  %s1020_s6 = inlined_call_operand.vmem [shape: f32[1,128], index: 6, kind: input, shape index: {}]   ;;  %s1021_s7 = inlined_call_operand.vmem [shape: bf16[128,128], index: 7, kind: input, shape index: {}]   ;;  %s1022_s8 = inlined_call_operand.vmem [shape: f32[1,128], index: 8, kind: input, shape index: {}]   ;;  %s1023_s9 = inlined_call_operand.hbm [shape: f32[16,128], index: 9, kind: output, shape index: {}]  }
   0x1   :  { %v717_v0 = vld [vmem:[%s1015_s1 + $0x18] sm:$0xff]   ;;  %679 = vmatprep.subr.bf16.mxu0 %v792_v1  ;;  %v718_v2 = vld [vmem:[%s1015_s1 + $0x10] sm:$0xff]   ;;  %687 = vmatprep.mubr.msk.bf16.mxu0 %vm793_vm0, %v792_v1  ;;  %v719_v3 = vld [vmem:[%s1015_s1 + $0x8] sm:$0xff]  }
   0x2   :  { %680 = vmatpush3.bf16.msra.mxu0 %v717_v0  ;;  %v722_v4 = vld [vmem:[%s1017_s3 + $0x74] ss:$8 sps:$4 sm:$0xff]   ;;  %v724_v5 = vld [vmem:[%s1017_s3 + $0x70] ss:$8 sps:$4 sm:$0xff]   ;;  %v725_v6 = vld [vmem:[%s1017_s3 + $0x64] ss:$8 sps:$4 sm:$0xff]  }
   0x3   :  { %681 = vmatprep.subr.bf16.mxu0 %v792_v1  ;;  %236 = vmatprep.subr.bf16.mxu1 %v722_v4  ;;  %v727_v7 = vld [vmem:[%s1017_s3 + $0x60] ss:$8 sps:$4 sm:$0xff]   ;;  %v728_v8 = vld [vmem:[%s1017_s3 + $0x54] ss:$8 sps:$4 sm:$0xff]   ;;  %v730_v11 = vld [vmem:[%s1017_s3 + $0x50] ss:$8 sps:$4 sm:$0xff]  }
   0x4   :  { %237 = vmatpush1.bf16.msra.mxu1 %v724_v5  ;;  %v720_v9 = vld [vmem:[%s1015_s1] sm:$0xff]   ;;  %v734_v14 = vld [vmem:[%s1017_s3 + $0x34] ss:$8 sps:$4 sm:$0xff]   ;;  %v736_v15 = vld [vmem:[%s1017_s3 + $0x30] ss:$8 sps:$4 sm:$0xff]  }
   0x5   :  { %238 = vmatprep.subr.bf16.mxu1 %v725_v6  ;;  %v721_v10 = vld [vmem:[%s1014_s0] sm:$0xff]  }
   0x6   :  { %682 = vmatpush3.bf16.msra.mxu0 %v718_v2  ;;  %v731_v12 = vld [vmem:[%s1017_s3 + $0x44] ss:$8 sps:$4 sm:$0xff]   ;;  %v733_v13 = vld [vmem:[%s1017_s3 + $0x40] ss:$8 sps:$4 sm:$0xff]  }
   0x7   :  { %683 = vmatprep.subr.bf16.mxu0 %v792_v1  ;;  %v737_v16 = vld [vmem:[%s1017_s3 + $0x24] ss:$8 sps:$4 sm:$0xff]  }
   0x8   :  { %239 = vmatpush1.bf16.msra.mxu1 %v727_v7 }
   0x9   :  { %240 = vmatprep.subr.bf16.mxu1 %v728_v8 }
   0xa   :  { %684 = vmatpush3.bf16.msra.mxu0 %v719_v3 }
   0xb   :  { %685 = vmatprep.subr.bf16.mxu0 %v792_v1 }
   0xc   :  { %241 = vmatpush1.bf16.msra.mxu1 %v730_v11 }
   0xd   :  { %242 = vmatprep.subr.bf16.mxu1 %v731_v12 }
   0xe   :  { %686 = vmatpush3.bf16.msra.mxu0 %v720_v9 }
  0x10   :  { %243 = vmatpush1.bf16.msra.mxu1 %v733_v13 }
  0x11   :  { %688 = vmatmul.mubr.msk.bf16.vlgmr.msra.gmra.mxu0 %vm80_vm1, %v721_v10  ;;  %244 = vmatprep.subr.bf16.mxu1 %v734_v14 }
  0x14   :  { %245 = vmatpush1.bf16.msra.mxu1 %v736_v15 }
  0x15   :  { %246 = vmatprep.subr.bf16.mxu1 %v737_v16 }
  0x16   :  { %14 = vsyncpa [#allocation3], 0  ;;  %v739_v17 = vld [vmem:[%s1017_s3 + $0x20] ss:$8 sps:$4 sm:$0xff]   ;;  %v740_v18 = vld [vmem:[%s1017_s3 + $0x14] ss:$8 sps:$4 sm:$0xff]   ;;  %v146_v53 = vlaneseq }
  0x17   :  { %v742_v19 = vld [vmem:[%s1017_s3 + $0x10] ss:$8 sps:$4 sm:$0xff]   ;;  %v743_v20 = vld [vmem:[%s1017_s3 + $0x4] ss:$8 sps:$4 sm:$0xff]   ;;  %v745_v21 = vld [vmem:[%s1017_s3] ss:$8 sps:$4 sm:$0xff]  }
  0x18   :  { %247 = vmatpush1.bf16.msra.mxu1 %v739_v17  ;;  %v794_v22 = vmov 0   ;;  %v746_v23 = vld [vmem:[%s1019_s5 + $0x78] sm:$0xff]   ;;  %v748_v25 = vld [vmem:[%s1019_s5 + $0x70] sm:$0xff]   ;;  %v750_v27 = vld [vmem:[%s1019_s5 + $0x68] sm:$0xff]   ;;  %v147_v54 = vshrl.u32 %v146_v53, 7 }
  0x19   :  { %248 = vmatprep.subr.bf16.mxu1 %v740_v18  ;;  %268 = vmatprep.mubr.bf16.mxu1 %v794_v22  ;;  %v747_v24 = vld [vmem:[%s1019_s5 + $0x38] sm:$0xff]   ;;  %v749_v26 = vld [vmem:[%s1019_s5 + $0x30] sm:$0xff]   ;;  %v751_v28 = vld [vmem:[%s1019_s5 + $0x28] sm:$0xff]  }
  0x1a   :  { %648 = vmatprep.subr.bf16.mxu0 %v746_v23  ;;  %v752_v29 = vld [vmem:[%s1019_s5 + $0x60] sm:$0xff]   ;;  %v754_v31 = vld [vmem:[%s1019_s5 + $0x58] sm:$0xff]   ;;  %v756_v43 = vld [vmem:[%s1019_s5 + $0x50] sm:$0xff]   ;;  %v152_v55 = vsub.s32 1, %v147_v54  ;;  %v148_v56 = vsub.s32 0, %v147_v54 }
  0x1b   :  { %649 = vmatpush3.bf16.msra.mxu0 %v747_v24  ;;  %v753_v30 = vld [vmem:[%s1019_s5 + $0x20] sm:$0xff]   ;;  %v755_v32 = vld [vmem:[%s1019_s5 + $0x18] sm:$0xff]   ;;  %v757_v44 = vld [vmem:[%s1019_s5 + $0x10] sm:$0xff]  }
  0x1c   :  { %249 = vmatpush1.bf16.msra.mxu1 %v742_v19  ;;  %650 = vmatprep.subr.bf16.mxu0 %v748_v25  ;;  %v594_v33 = vld [vmem:[%s1016_s2] ss:$0 sm:$0xff]  ;;  %v758_v45 = vld [vmem:[%s1019_s5 + $0x48] sm:$0xff]   ;;  %v762_v49 = vld [vmem:[%s1021_s7 + $0x38] sm:$0xff]  }
  0x1d   :  { %250 = vmatprep.subr.bf16.mxu1 %v743_v20  ;;  %v759_v46 = vld [vmem:[%s1019_s5 + $0x8] sm:$0xff]   ;;  %v760_v47 = vld [vmem:[%s1019_s5 + $0x40] sm:$0xff]   ;;  %v763_v50 = vld [vmem:[%s1021_s7 + $0x30] sm:$0xff]  }
  0x1e   :  { %v761_v48 = vld [vmem:[%s1019_s5] sm:$0xff]   ;;  %v764_v51 = vld [vmem:[%s1021_s7 + $0x28] sm:$0xff]   ;;  %v766_v11 = vld [vmem:[%s1021_s7 + $0x18] sm:$0xff]  }
  0x1f   :  { %651 = vmatpush3.bf16.msra.mxu0 %v749_v26  ;;  %v765_v52 = vld [vmem:[%s1021_s7 + $0x20] sm:$0xff]   ;;  %v767_v12 = vld [vmem:[%s1021_s7 + $0x10] sm:$0xff]   ;;  %v768_v13 = vld [vmem:[%s1021_s7 + $0x8] sm:$0xff]  }
  0x20   :  { %251 = vmatpush1.bf16.msra.mxu1 %v745_v21  ;;  %652 = vmatprep.subr.bf16.mxu0 %v750_v27  ;;  %v144_v57 = vld [vmem:[%s1018_s4] sm:$0x3] }
  0x21   :  { %691 = vmatprep.subr.bf16.mxu1 %v792_v1  ;;  %v153_v59 = vrot.slane %v144_v57, %v152_v55  ;;  %v149_v60 = vrot.slane %v144_v57, %v148_v56  ;;  %v769_v14 = vld [vmem:[%s1021_s7] sm:$0xff]   ;;  %s795_s7 = smov [#allocation2]  }
  0x22   :  { %v617_v18 = vld [vmem:[%s1020_s6] ss:$0 sm:$0xff]  ;;  %s583_s11 = sshll.u32 %s795_s7, 4  ;;  %s584_s11 = int_to_ptr.vmem [resolvable:$true] %s583_s11 }
  0x23   :  { %653 = vmatpush3.bf16.msra.mxu0 %v751_v28  ;;  %v634_v26 = vld [vmem:[%s1022_s8] ss:$0 sm:$0xff]  ;;  %s770_s6 = scalar_lea.vmem %s584_s11, 256  ;;  %p775_p1 = scmp.lt.s32.totalorder %s584_s11, %s584_s11 }
  0x24   :  { %654 = vmatprep.subr.bf16.mxu0 %v752_v29  ;;  %p771_p0 = scmp.ne.s32.totalorder %s584_s11, %s770_s6  ;;  %p776_p2 = scmp.lt.s32.totalorder %s770_s6, %s770_s6 }
  0x26   :  { %p777_p3 = por %p776_p2, %p775_p1 }
  0x27   :  { %655 = vmatpush3.bf16.msra.mxu0 %v753_v30 }
  0x28   :  { %656 = vmatprep.subr.bf16.mxu0 %v754_v31  ;;  %p778_p4 = pnand %p777_p3, %p771_p0 }
  0x2b   :  { %657 = vmatpush3.bf16.msra.mxu0 %v755_v32 }
  0x2c   :  { %658 = vmatprep.subr.bf16.mxu0 %v756_v43 }
  0x2f   :  { %659 = vmatpush3.bf16.msra.mxu0 %v757_v44 }
  0x30   :  { %660 = vmatprep.subr.bf16.mxu0 %v758_v45 }
  0x33   :  { %661 = vmatpush3.bf16.msra.mxu0 %v759_v46 }
  0x34   :  { %662 = vmatprep.subr.bf16.mxu0 %v760_v47 }
  0x37   :  { %663 = vmatpush3.bf16.msra.mxu0 %v761_v48 }
  0xd1   :  { %v118_v34 = vpop.f32.mrf.mxu0 }
  0xd2   :  { %v119_v36 = vadd.f32 %v594_v33, %v118_v34 }
  0xd3   :  { %v689_v35 = vpop.f32.mrf.mxu0 }
  0xd4   :  { %v125_v40 = vmax.f32 %v119_v36, 0.0 }
  0xd5   :  { %v121_v37 = vpop.f32.mrf.mxu0 }
  0xd6   :  { %v122_v38 = vadd.f32 %v594_v33, %v121_v37 }
  0xd7   :  { %v690_v39 = vpop.f32.mrf.mxu0 }
  0xd8   :  { %v126_v41 = vmax.f32 %v122_v38, 0.0 }
  0xda   :  { %v127_v42 = vpack.c.bf16 %v126_v41, %v125_v40 }
  0xdc   :  { %269 = vmatmul.mubr.bf16.vlgmr.msra.gmra.mxu1 %v127_v42 }
  0xdd   :  { %707 = vmatprep.mubr.msk.bf16.mxu1 %vm793_vm0, %v792_v1  ;;  %692 = vmatpush3.bf16.msra.mxu1 %v762_v49 }
  0xde   :  { %693 = vmatprep.subr.bf16.mxu1 %v792_v1 }
  0xe1   :  { %694 = vmatpush3.bf16.msra.mxu1 %v763_v50 }
  0xe2   :  { %695 = vmatprep.subr.bf16.mxu1 %v792_v1 }
  0xe5   :  { %696 = vmatpush3.bf16.msra.mxu1 %v764_v51 }
  0xe6   :  { %697 = vmatprep.subr.bf16.mxu1 %v792_v1 }
  0xe9   :  { %698 = vmatpush3.bf16.msra.mxu1 %v765_v52 }
  0xea   :  { %699 = vmatprep.subr.bf16.mxu1 %v792_v1 }
  0xed   :  { %700 = vmatpush3.bf16.msra.mxu1 %v766_v11 }
  0xee   :  { %701 = vmatprep.subr.bf16.mxu1 %v792_v1 }
  0xf1   :  { %702 = vmatpush3.bf16.msra.mxu1 %v767_v12 }
  0xf2   :  { %703 = vmatprep.subr.bf16.mxu1 %v792_v1 }
  0xf5   :  { %704 = vmatpush3.bf16.msra.mxu1 %v768_v13 }
  0xf6   :  { %705 = vmatprep.subr.bf16.mxu1 %v792_v1 }
  0xf9   :  { %706 = vmatpush3.bf16.msra.mxu1 %v769_v14 }
 0x19c   :  { %v270_v58 = vpop.f32.mrf.mxu1 }
 0x19d   :  { %v271_v2 = vadd.f32 %v270_v58, %v149_v60 }
 0x19e   :  { %v272_v61 = vpop.f32.mrf.mxu1 }
 0x19f   :  { %v273_v63 = vadd.f32 %v272_v61, %v153_v59  ;;  %v279_v8 = vmax.f32 %v271_v2, 0.0 }
 0x1a0   :  { %v274_v62 = vpop.f32.mrf.mxu1 }
 0x1a1   :  { %v275_v0 = vadd.f32 %v274_v62, %v149_v60  ;;  %v280_v6 = vmax.f32 %v273_v63, 0.0 }
 0x1a2   :  { %v276_v3 = vpop.f32.mrf.mxu1 }
 0x1a3   :  { %v277_v4 = vadd.f32 %v276_v3, %v153_v59  ;;  %v281_v5 = vmax.f32 %v275_v0, 0.0 }
 0x1a5   :  { %v282_v7 = vmax.f32 %v277_v4, 0.0  ;;  %v283_v10 = vpack.c.bf16 %v281_v5, %v279_v8 }
 0x1a7   :  { %v284_v9 = vpack.c.bf16 %v282_v7, %v280_v6 }
 0x1a9   :  { %452 = vmatprep.mubr.bf16.mxu0 %v284_v9 }
 0x1aa   :  { %453 = vmatmul.mubr.bf16.vlgmr.msra.gmra.mxu0 %v283_v10 }
 0x26a   :  { %v664_v15 = vpop.f32.mrf.mxu0 }
 0x26c   :  { %v665_v16 = vpop.f32.mrf.mxu0 }
 0x26d   :  { %v666_v17 = vadd.f32 %v665_v16, %v664_v15 }
 0x26e   :  { %v667_v19 = vpop.f32.mrf.mxu0 }
 0x26f   :  { %v455_v21 = vadd.f32 %v666_v17, %v617_v18 }
 0x270   :  { %v668_v20 = vpop.f32.mrf.mxu0 }
 0x271   :  { %v669_v22 = vadd.f32 %v668_v20, %v667_v19  ;;  %v461_v24 = vmax.f32 %v455_v21, 0.0 }
 0x273   :  { %v458_v23 = vadd.f32 %v669_v22, %v617_v18 }
 0x275   :  { %v462_v25 = vmax.f32 %v458_v23, 0.0 }
 0x277   :  { %v463_v1 = vpack.c.bf16 %v462_v25, %v461_v24 }
 0x279   :  { %708 = vmatmul.mubr.bf16.vlgmr.msra.gmra.mxu1 %v463_v1 }
 0x339   :  { %v569_v27 = vpop.f32.mrf.mxu1 }
 0x33a   :  { %v570_v28 = vadd.f32 %v634_v26, %v569_v27 }
 0x33b   :  { %v709_v29 = vpop.f32.mrf.mxu1 }
 0x33c   :  { %576 = vst [vmem:[#allocation2] sm:$0xff] %v570_v28 }
 0x33d   :  { %v572_v30 = vpop.f32.mrf.mxu1 }
 0x33e   :  { %v573_v31 = vadd.f32 %v634_v26, %v572_v30 }
 0x33f   :  { %v710_v32 = vpop.f32.mrf.mxu1 }
 0x340   :  { %577 = vst [vmem:[#allocation2 + $0x8] sm:$0xff] %v573_v31 }
 0x341   :  { %781 = shalt.err (!%p778_p4)
}
 0x342   :  { %s796_s12 = smov 128   ;;  %s797_s8 = smov 8  }
 0x343   :  { %589 = dma.vmem_to_hbm [thread:$0]  %s584_s11, 256, %s1023_s9, [#allocation3], %s796_s12, %s796_s12, %s797_s8  }
 0x344   :  { %790 = dma.done.wait [#allocation3], 256  }
 0x345   :  { %791 = vsyncadd [#allocation3], 4294967040 }
 0x346   :  { %593 = vsyncpa [#allocation3], 1 }

</bundles_post_ra>
